<compile_context>
chip_gen: v6e
topology: v6e:2x2x1
jax: 0.10.0
libtpu: 0.0.40
codegen_flags: <defaults>
</compile_context>

<pallas_src>
import jax
import jax.numpy as jnp
from jax.experimental import pallas as pl
from jax.experimental.pallas import tpu as pltpu


def _round_up(x, m):
    return (x + m - 1) // m * m


_MAX_UNTILED_NODES = 512  # below this, one full-array block (single grid step)


def _vmem_capacity_bytes():
    """Best-effort per-core VMEM capacity (128 MiB v5e/v6e, 64 MiB/TC v7x)."""
    try:
        info = pltpu.get_tpu_info()
        cap = getattr(info, "vmem_capacity_bytes", None)
        if cap:
            return int(cap)
    except Exception:
        pass
    return 64 * 1024 * 1024  # conservative (v7x per-TC) fallback


def _select_row_tile(n, vmem_budget):
    """Pick (tm, n_pad): largest row tile whose working set fits the VMEM budget.

    Per pallas_call working set (bytes):
      double-buffered bf16 adj row slab            : 2 * tm * n_pad * 2
      resident XW1 / HW operand (bf16, 128 lanes)  : 2 * n_pad * 128 * 2
      double-buffered output tiles (f32 + bf16)    : 2 * tm * 128 * 6
    """
    if n <= _MAX_UNTILED_NODES:
        return n, n
    for tm in (1024, 512, 256, 128):
        n_pad = _round_up(n, tm)
        need = 4 * tm * n_pad + 512 * n_pad + 12 * tm * 128
        if need <= vmem_budget:
            return tm, n_pad
    # TODO(synk): graphs where the resident [n_pad, 128] operand itself exceeds
    # VMEM additionally need contraction-dim tiling; not required at these sizes.
    return 128, _round_up(n, 128)


def _gcn_layer1_kernel(adj_ref, xw1_ref, b1_ref, w2_ref, x1_ref, hw_ref):
    """Row tile i:  x1_i = relu(adj[i, :] @ XW1 + b1);  HW_i = x1_i @ W2."""
    h = jnp.dot(adj_ref[...], xw1_ref[...], preferred_element_type=jnp.float32)
    x1 = jnp.maximum(h + b1_ref[...], 0.0)   # bias + ReLU on the f32 accumulator
    x1_ref[...] = x1.astype(x1_ref.dtype)
    # TODO(synk): training-mode dropout (pltpu.prng_random_bits mask) not applied;
    # eval mode => identity, so x1 feeds layer 2 unchanged.
    hw = jnp.dot(x1.astype(jnp.bfloat16), w2_ref[...],
                 preferred_element_type=jnp.float32)
    hw_ref[...] = hw.astype(hw_ref.dtype)    # bf16, lane-dense (cp = 128k)


def _gcn_layer2_kernel(adj_ref, hw_ref, b2_ref, x2_ref):
    """Row tile i:  x2_i = adj[i, :] @ HW + b2  (single dense store per tile)."""
    acc = jnp.dot(adj_ref[...], hw_ref[...], preferred_element_type=jnp.float32)
    x2_ref[...] = (acc + b2_ref[...]).astype(x2_ref.dtype)


def gcn_forward(feature, adj, params):
    """Two-layer GCN forward. Returns (x1, x2) with logical shapes."""
    w1, b1, w2, b2 = params
    n, f_in = feature.shape
    hidden = w1.shape[1]
    n_class = w2.shape[1]

    hp = _round_up(hidden, 128)   # lane-pad per-layer output widths
    cp = _round_up(n_class, 128)

    vmem_cap = _vmem_capacity_bytes()
    vmem_limit = max(32 * 1024 * 1024,
                     min(int(vmem_cap * 0.85), 100 * 1024 * 1024))
    tm, n_pad = _select_row_tile(n, int(vmem_cap * 0.6))
    nt = n_pad // tm

    # Zero row/col padding is exact: padded adj columns are zero, so padded x1/HW
    # rows (= relu(b1) @ W2, nonzero) never contribute to real outputs.
    if n_pad != n:
        adj_p = jnp.zeros((n_pad, n_pad), adj.dtype).at[:n, :n].set(adj)
        x_p = jnp.zeros((n_pad, f_in), feature.dtype).at[:n, :].set(feature)
    else:
        adj_p, x_p = adj, feature

    # bf16 MXU operands (halves adj HBM traffic); accumulation stays f32 in-kernel.
    adj_bf = adj_p.astype(jnp.bfloat16)

    # Hoisted: XW1 = feature @ W1 (tiny K=f_in matmul), lane-padded, bf16.
    w1_p = jnp.zeros((f_in, hp), jnp.float32).at[:, :hidden].set(
        w1.astype(jnp.float32))
    xw1_bf = jnp.dot(x_p.astype(jnp.bfloat16), w1_p.astype(jnp.bfloat16),
                     preferred_element_type=jnp.float32).astype(jnp.bfloat16)

    b1_p = jnp.zeros((1, hp), jnp.float32).at[:, :hidden].set(
        b1.reshape(1, -1).astype(jnp.float32))
    w2_bf = jnp.zeros((hp, cp), jnp.float32).at[:hidden, :n_class].set(
        w2.astype(jnp.float32)).astype(jnp.bfloat16)
    b2_p = jnp.zeros((1, cp), jnp.float32).at[:, :n_class].set(
        b2.reshape(1, -1).astype(jnp.float32))

    cparams = pltpu.CompilerParams(dimension_semantics=("parallel",),
                                   vmem_limit_bytes=vmem_limit)

    # ---- phase 1: x1 tile + HW tile per contiguous adj row slab -------------
    cost1 = pl.CostEstimate(
        flops=int(2 * n_pad * n_pad * hp + 2 * n_pad * hp * cp),
        transcendentals=0,
        bytes_accessed=int(n_pad * n_pad * 2 + n_pad * hp * 2 + hp * cp * 2
                           + hp * 4 + n_pad * hp * 4 + n_pad * cp * 2))
    x1_p, hw_bf = pl.pallas_call(
        _gcn_layer1_kernel,
        out_shape=(jax.ShapeDtypeStruct((n_pad, hp), jnp.float32),
                   jax.ShapeDtypeStruct((n_pad, cp), jnp.bfloat16)),
        grid_spec=pltpu.PrefetchScalarGridSpec(
            num_scalar_prefetch=0,
            grid=(nt,),
            in_specs=[
                pl.BlockSpec((tm, n_pad), lambda i: (i, 0)),   # adj row slab
                pl.BlockSpec((n_pad, hp), lambda i: (0, 0)),   # XW1 (resident)
                pl.BlockSpec((1, hp), lambda i: (0, 0)),       # b1 (f32)
                pl.BlockSpec((hp, cp), lambda i: (0, 0)),      # W2 (resident)
            ],
            out_specs=[
                pl.BlockSpec((tm, hp), lambda i: (i, 0)),      # x1 tile
                pl.BlockSpec((tm, cp), lambda i: (i, 0)),      # HW tile (bf16)
            ],
        ),
        compiler_params=cparams,
        cost_estimate=cost1,
    )(adj_bf, xw1_bf, b1_p, w2_bf)

    # ---- phase 2: x2 tile per adj row slab (re-stream contiguous rows) ------
    cost2 = pl.CostEstimate(
        flops=int(2 * n_pad * n_pad * cp),
        transcendentals=0,
        bytes_accessed=int(n_pad * n_pad * 2 + n_pad * cp * 2 + cp * 4
                           + n_pad * cp * 4))
    x2_p = pl.pallas_call(
        _gcn_layer2_kernel,
        out_shape=jax.ShapeDtypeStruct((n_pad, cp), jnp.float32),
        grid_spec=pltpu.PrefetchScalarGridSpec(
            num_scalar_prefetch=0,
            grid=(nt,),
            in_specs=[
                pl.BlockSpec((tm, n_pad), lambda i: (i, 0)),   # adj row slab
                pl.BlockSpec((n_pad, cp), lambda i: (0, 0)),   # HW (resident)
                pl.BlockSpec((1, cp), lambda i: (0, 0)),       # b2 (f32)
            ],
            out_specs=pl.BlockSpec((tm, cp), lambda i: (i, 0)),
        ),
        compiler_params=cparams,
        cost_estimate=cost2,
    )(adj_bf, hw_bf, b2_p)

    # Slice padded rows / lane-padded feature columns back to logical shapes.
    x1 = x1_p[:n, :hidden]
    x2 = x2_p[:n, :n_class]
    return x1, x2


def _glorot(key, shape, dtype=jnp.float32):
    fan_in, fan_out = shape
    lim = jnp.sqrt(6.0 / (fan_in + fan_out)).astype(dtype)
    return jax.random.uniform(key, shape, dtype, minval=-lim, maxval=lim)


if __name__ == "__main__":
    key = jax.random.PRNGKey(0)
    k_feat, k_adj, k_w1, k_w2 = jax.random.split(key, 4)

    num_nodes = 16
    num_feature = 8
    hidden_size = 32
    num_class = 4

    # Node features [N, F]
    feature = jax.random.normal(k_feat, (num_nodes, num_feature), jnp.float32)

    # Symmetric normalized adjacency with self-loops: D^-1/2 (A + I) D^-1/2
    a = (jax.random.uniform(k_adj, (num_nodes, num_nodes)) > 0.7).astype(jnp.float32)
    a = jnp.maximum(a, a.T)
    a = a + jnp.eye(num_nodes, dtype=jnp.float32)
    d_inv_sqrt = 1.0 / jnp.sqrt(a.sum(axis=1))
    adj = a * d_inv_sqrt[:, None] * d_inv_sqrt[None, :]

    # Parameters (deterministic glorot init, zero bias) — shapes from __init__:
    #   conv1: W1 [num_feature, hidden_size], b1 [1, hidden_size]
    #   conv2: W2 [hidden_size, num_class],   b2 [1, num_class]
    w1 = _glorot(k_w1, (num_feature, hidden_size))
    b1 = jnp.zeros((1, hidden_size), jnp.float32)
    w2 = _glorot(k_w2, (hidden_size, num_class))
    b2 = jnp.zeros((1, num_class), jnp.float32)
    params = (w1, b1, w2, b2)

    x1, x2 = jax.jit(gcn_forward)(feature, adj, params)
    jax.block_until_ready((x1, x2))

    assert x1.shape == (num_nodes, hidden_size)
    assert x2.shape == (num_nodes, num_class)

    # (a) Tight check against a reference that mimics the kernel's bf16-input /
    #     f32-accumulate math with the same association (support = x@W first).
    bf, f32 = jnp.bfloat16, jnp.float32
    adj_q = adj.astype(bf)
    xw1_r = jnp.dot(feature.astype(bf), w1.astype(bf),
                    preferred_element_type=f32).astype(bf)
    ref_x1_q = jnp.maximum(
        jnp.dot(adj_q, xw1_r, preferred_element_type=f32) + b1, 0.0)
    hw_r = jnp.dot(ref_x1_q.astype(bf), w2.astype(bf),
                   preferred_element_type=f32).astype(bf)
    ref_x2_q = jnp.dot(adj_q, hw_r, preferred_element_type=f32) + b2
    assert jnp.allclose(x1, ref_x1_q, atol=5e-3, rtol=5e-3), \
        float(jnp.max(jnp.abs(x1 - ref_x1_q)))
    assert jnp.allclose(x2, ref_x2_q, atol=5e-3, rtol=5e-3), \
        float(jnp.max(jnp.abs(x2 - ref_x2_q)))

    # (b) Loose check against the plain f32 reference (tolerance covers bf16 inputs).
    ref_x1 = jnp.maximum(adj @ (feature @ w1) + b1, 0.0)
    ref_x2 = adj @ (ref_x1 @ w2) + b2
    assert jnp.allclose(x1, ref_x1, atol=1e-1, rtol=1e-1), \
        float(jnp.max(jnp.abs(x1 - ref_x1)))
    assert jnp.allclose(x2, ref_x2, atol=1e-1, rtol=1e-1), \
        float(jnp.max(jnp.abs(x2 - ref_x2)))

    print("KERNEL_OK")
</pallas_src>

<mosaic_0001>
module attributes {stable_mosaic.version = 11 : i64} {
  func.func @_gcn_layer1_kernel(%arg0: i32, %arg1: memref<16x16xbf16, #tpu.memory_space<vmem>>, %arg2: memref<16x128xbf16, #tpu.memory_space<vmem>>, %arg3: memref<1x128xf32, #tpu.memory_space<vmem>>, %arg4: memref<128x128xbf16, #tpu.memory_space<vmem>>, %arg5: memref<16x128xf32, #tpu.memory_space<vmem>>, %arg6: memref<16x128xbf16, #tpu.memory_space<vmem>>) attributes {dimension_semantics = [#tpu.dimension_semantics<parallel>], iteration_bounds = array<i64: 1>, scalar_prefetch = 0 : i64, scratch_operands = 0 : i64, tpu.core_type = #tpu.core_type<tc>, window_params = [{transform_indices = @transform_0, window_bounds = array<i64: 16, 16>}, {pipeline_mode = #tpu.pipeline_mode<synchronous>, transform_indices = @transform_1, window_bounds = array<i64: 16, 128>}, {pipeline_mode = #tpu.pipeline_mode<synchronous>, transform_indices = @transform_2, window_bounds = array<i64: 1, 128>}, {pipeline_mode = #tpu.pipeline_mode<synchronous>, transform_indices = @transform_3, window_bounds = array<i64: 128, 128>}, {transform_indices = @transform_4, window_bounds = array<i64: 16, 128>}, {transform_indices = @transform_5, window_bounds = array<i64: 16, 128>}]} {
    %c0 = arith.constant 0 : index
    %c0_0 = arith.constant 0 : index
    %0 = vector.load %arg1[%c0, %c0_0] : memref<16x16xbf16, #tpu.memory_space<vmem>>, vector<16x16xbf16>
    %c0_1 = arith.constant 0 : index
    %c0_2 = arith.constant 0 : index
    %1 = vector.load %arg2[%c0_1, %c0_2] : memref<16x128xbf16, #tpu.memory_space<vmem>>, vector<16x128xbf16>
    %cst = arith.constant dense<0.000000e+00> : vector<16x128xf32>
    %2 = tpu.matmul %0, %1, %cst {dimension_numbers = #tpu.dot_dimension_numbers<[1], [0], [0], [1], [0, 0, 1, 1], [], []>} : vector<16x16xbf16>, vector<16x128xbf16>, vector<16x128xf32> -> vector<16x128xf32>
    %c0_3 = arith.constant 0 : index
    %c0_4 = arith.constant 0 : index
    %3 = vector.load %arg3[%c0_3, %c0_4] : memref<1x128xf32, #tpu.memory_space<vmem>>, vector<1x128xf32>
    %4 = vector.broadcast %3 : vector<1x128xf32> to vector<16x128xf32>
    %5 = arith.addf %2, %4 : vector<16x128xf32>
    %cst_5 = arith.constant 0.000000e+00 : f32
    %6 = vector.broadcast %cst_5 : f32 to vector<16x128xf32>
    %7 = arith.maximumf %5, %6 : vector<16x128xf32>
    %c0_6 = arith.constant 0 : index
    %c0_7 = arith.constant 0 : index
    %8 = vector.load %arg5[%c0_6, %c0_7] : memref<16x128xf32, #tpu.memory_space<vmem>>, vector<16x128xf32>
    tpu.vector_store %arg5[%c0_6, %c0_7], %7 {strides = array<i32>} : memref<16x128xf32, #tpu.memory_space<vmem>>, vector<16x128xf32>,
    %9 = arith.truncf %7 : vector<16x128xf32> to vector<16x128xbf16>
    %c0_8 = arith.constant 0 : index
    %c0_9 = arith.constant 0 : index
    %10 = vector.load %arg4[%c0_8, %c0_9] : memref<128x128xbf16, #tpu.memory_space<vmem>>, vector<128x128xbf16>
    %cst_10 = arith.constant dense<0.000000e+00> : vector<16x128xf32>
    %11 = tpu.matmul %9, %10, %cst_10 {dimension_numbers = #tpu.dot_dimension_numbers<[1], [0], [0], [1], [0, 0, 1, 1], [], []>} : vector<16x128xbf16>, vector<128x128xbf16>, vector<16x128xf32> -> vector<16x128xf32>
    %12 = arith.truncf %11 : vector<16x128xf32> to vector<16x128xbf16>
    %c0_11 = arith.constant 0 : index
    %c0_12 = arith.constant 0 : index
    %13 = vector.load %arg6[%c0_11, %c0_12] : memref<16x128xbf16, #tpu.memory_space<vmem>>, vector<16x128xbf16>
    tpu.vector_store %arg6[%c0_11, %c0_12], %12 {strides = array<i32>} : memref<16x128xbf16, #tpu.memory_space<vmem>>, vector<16x128xbf16>,
    return
  }
  func.func @transform_0(%arg0: i32) -> (i32, i32) {
    %c0_i32 = arith.constant 0 : i32
    %c0_i32_0 = arith.constant 0 : i32
    return %arg0, %c0_i32 : i32, i32
  }
  func.func @transform_1(%arg0: i32) -> (i32, i32) {
    %c0_i32 = arith.constant 0 : i32
    %c0_i32_0 = arith.constant 0 : i32
    %c0_i32_1 = arith.constant 0 : i32
    return %c0_i32, %c0_i32_0 : i32, i32
  }
  func.func @transform_2(%arg0: i32) -> (i32, i32) {
    %c0_i32 = arith.constant 0 : i32
    %c0_i32_0 = arith.constant 0 : i32
    %c0_i32_1 = arith.constant 0 : i32
    return %c0_i32, %c0_i32_0 : i32, i32
  }
  func.func @transform_3(%arg0: i32) -> (i32, i32) {
    %c0_i32 = arith.constant 0 : i32
    %c0_i32_0 = arith.constant 0 : i32
    %c0_i32_1 = arith.constant 0 : i32
    return %c0_i32, %c0_i32_0 : i32, i32
  }
  func.func @transform_4(%arg0: i32) -> (i32, i32) {
    %c0_i32 = arith.constant 0 : i32
    %c0_i32_0 = arith.constant 0 : i32
    return %arg0, %c0_i32 : i32, i32
  }
  func.func @transform_5(%arg0: i32) -> (i32, i32) {
    %c0_i32 = arith.constant 0 : i32
    %c0_i32_0 = arith.constant 0 : i32
    return %arg0, %c0_i32 : i32, i32
  }
}

module attributes {stable_mosaic.version = 11 : i64} {
  func.func @_gcn_layer2_kernel(%arg0: i32, %arg1: memref<16x16xbf16, #tpu.memory_space<vmem>>, %arg2: memref<16x128xbf16, #tpu.memory_space<vmem>>, %arg3: memref<1x128xf32, #tpu.memory_space<vmem>>, %arg4: memref<16x128xf32, #tpu.memory_space<vmem>>) attributes {dimension_semantics = [#tpu.dimension_semantics<parallel>], iteration_bounds = array<i64: 1>, scalar_prefetch = 0 : i64, scratch_operands = 0 : i64, tpu.core_type = #tpu.core_type<tc>, window_params = [{transform_indices = @transform_0, window_bounds = array<i64: 16, 16>}, {pipeline_mode = #tpu.pipeline_mode<synchronous>, transform_indices = @transform_1, window_bounds = array<i64: 16, 128>}, {pipeline_mode = #tpu.pipeline_mode<synchronous>, transform_indices = @transform_2, window_bounds = array<i64: 1, 128>}, {transform_indices = @transform_3, window_bounds = array<i64: 16, 128>}]} {
    %c0 = arith.constant 0 : index
    %c0_0 = arith.constant 0 : index
    %0 = vector.load %arg1[%c0, %c0_0] : memref<16x16xbf16, #tpu.memory_space<vmem>>, vector<16x16xbf16>
    %c0_1 = arith.constant 0 : index
    %c0_2 = arith.constant 0 : index
    %1 = vector.load %arg2[%c0_1, %c0_2] : memref<16x128xbf16, #tpu.memory_space<vmem>>, vector<16x128xbf16>
    %cst = arith.constant dense<0.000000e+00> : vector<16x128xf32>
    %2 = tpu.matmul %0, %1, %cst {dimension_numbers = #tpu.dot_dimension_numbers<[1], [0], [0], [1], [0, 0, 1, 1], [], []>} : vector<16x16xbf16>, vector<16x128xbf16>, vector<16x128xf32> -> vector<16x128xf32>
    %c0_3 = arith.constant 0 : index
    %c0_4 = arith.constant 0 : index
    %3 = vector.load %arg3[%c0_3, %c0_4] : memref<1x128xf32, #tpu.memory_space<vmem>>, vector<1x128xf32>
    %4 = vector.broadcast %3 : vector<1x128xf32> to vector<16x128xf32>
    %5 = arith.addf %2, %4 : vector<16x128xf32>
    %c0_5 = arith.constant 0 : index
    %c0_6 = arith.constant 0 : index
    %6 = vector.load %arg4[%c0_5, %c0_6] : memref<16x128xf32, #tpu.memory_space<vmem>>, vector<16x128xf32>
    tpu.vector_store %arg4[%c0_5, %c0_6], %5 {strides = array<i32>} : memref<16x128xf32, #tpu.memory_space<vmem>>, vector<16x128xf32>,
    return
  }
  func.func @transform_0(%arg0: i32) -> (i32, i32) {
    %c0_i32 = arith.constant 0 : i32
    %c0_i32_0 = arith.constant 0 : i32
    return %arg0, %c0_i32 : i32, i32
  }
  func.func @transform_1(%arg0: i32) -> (i32, i32) {
    %c0_i32 = arith.constant 0 : i32
    %c0_i32_0 = arith.constant 0 : i32
    %c0_i32_1 = arith.constant 0 : i32
    return %c0_i32, %c0_i32_0 : i32, i32
  }
  func.func @transform_2(%arg0: i32) -> (i32, i32) {
    %c0_i32 = arith.constant 0 : i32
    %c0_i32_0 = arith.constant 0 : i32
    %c0_i32_1 = arith.constant 0 : i32
    return %c0_i32, %c0_i32_0 : i32, i32
  }
  func.func @transform_3(%arg0: i32) -> (i32, i32) {
    %c0_i32 = arith.constant 0 : i32
    %c0_i32_0 = arith.constant 0 : i32
    return %arg0, %c0_i32 : i32, i32
  }
}

</mosaic_0001>

<bundles_post_ra>
// kernel: gcn_forward.3
= control target key start
LH: loop header
LB: loop body
LE: loop exit
PB: predicated region body
PF: predicated region fallthrough
CT: control target
= control target key end

     0   :  { %v104_v0 = vmov 0.0   ;;  %vm105_vm0 = vmmov 0   ;;  %vm37_vm1 = vcmask 130048   ;;  %s141_s1 = inlined_call_operand.vmem [shape: bf16[16,128], index: 1, kind: input, shape index: {}]   ;;  %s142_s0 = inlined_call_operand.vmem [shape: bf16[16,16], index: 0, kind: input, shape index: {}]   ;;  %s143_s2 = inlined_call_operand.vmem [shape: f32[1,128], index: 2, kind: input, shape index: {}]   ;;  %s144_s3 = inlined_call_operand.vmem [shape: f32[16,128], index: 3, kind: output, shape index: {}]  }
   0x1   :  { %94 = vmatprep.subr.bf16.mxu0 %v104_v0  ;;  %v102_v1 = vld [vmem:[%s141_s1] sm:$0xff]   ;;  %96 = vmatprep.mubr.msk.bf16.mxu0 %vm105_vm0, %v104_v0 }
   0x2   :  { %v103_v2 = vld [vmem:[%s142_s0] sm:$0xff]   ;;  %95 = vmatpush3.bf16.msra.mxu0 %v102_v1 }
   0x3   :  { %v88_v3 = vld [vmem:[%s143_s2] ss:$0 sm:$0xff] }
   0x5   :  { %97 = vmatmul.mubr.msk.bf16.vlgmr.msra.gmra.mxu0 %vm37_vm1, %v103_v2 }
  0xc5   :  { %v75_v4 = vpop.f32.mrf.mxu0 }
  0xc6   :  { %v76_v5 = vadd.f32 %v88_v3, %v75_v4 }
  0xc7   :  { %v98_v6 = vpop.f32.mrf.mxu0 }
  0xc8   :  { %82 = vst [vmem:[%s144_s3] sm:$0xff] %v76_v5 }
  0xc9   :  { %v78_v7 = vpop.f32.mrf.mxu0 }
  0xca   :  { %v79_v8 = vadd.f32 %v88_v3, %v78_v7 }
  0xcb   :  { %v99_v9 = vpop.f32.mrf.mxu0 }
  0xcc   :  { %83 = vst [vmem:[%s144_s3 + $0x8] sm:$0xff] %v79_v8 }

// kernel: gcn_forward.2
= control target key start
LH: loop header
LB: loop body
LE: loop exit
PB: predicated region body
PF: predicated region fallthrough
CT: control target
= control target key end

     0   :  { %v323_v1 = vmov 0.0   ;;  %vm324_vm0 = vmmov 0   ;;  %vm43_vm1 = vcmask 130048   ;;  %s397_s0 = inlined_call_operand.vmem [shape: bf16[16,16], index: 0, kind: input, shape index: {}]   ;;  %s398_s1 = inlined_call_operand.vmem [shape: bf16[16,128], index: 1, kind: input, shape index: {}]   ;;  %s399_s2 = inlined_call_operand.vmem [shape: f32[1,128], index: 2, kind: input, shape index: {}]   ;;  %s400_s3 = inlined_call_operand.vmem [shape: bf16[128,128], index: 3, kind: input, shape index: {}]   ;;  %s401_s4 = inlined_call_operand.hbm [shape: f32[16,128], index: 4, kind: output, shape index: {0}]   ;;  %s402_s5 = inlined_call_operand.vmem [shape: bf16[16,128], index: 5, kind: output, shape index: {1}]  }
   0x1   :  { %v291_v0 = vld [vmem:[%s398_s1] sm:$0xff]   ;;  %260 = vmatprep.subr.bf16.mxu0 %v323_v1  ;;  %266 = vmatprep.subr.bf16.mxu1 %v323_v1  ;;  %v293_v3 = vld [vmem:[%s400_s3 + $0x38] sm:$0xff]   ;;  %v294_v4 = vld [vmem:[%s400_s3 + $0x30] sm:$0xff]  }
   0x2   :  { %v292_v2 = vld [vmem:[%s397_s0] sm:$0xff]   ;;  %261 = vmatpush3.bf16.msra.mxu0 %v291_v0  ;;  %262 = vmatprep.mubr.msk.bf16.mxu0 %vm324_vm0, %v323_v1  ;;  %v295_v5 = vld [vmem:[%s400_s3 + $0x28] sm:$0xff]  }
   0x3   :  { %282 = vmatprep.mubr.msk.bf16.mxu1 %vm324_vm0, %v323_v1  ;;  %267 = vmatpush3.bf16.msra.mxu1 %v293_v3 }
   0x4   :  { %268 = vmatprep.subr.bf16.mxu1 %v323_v1 }
   0x5   :  { %263 = vmatmul.mubr.msk.bf16.vlgmr.msra.gmra.mxu0 %vm43_vm1, %v292_v2 }
   0x7   :  { %269 = vmatpush3.bf16.msra.mxu1 %v294_v4 }
   0x8   :  { %270 = vmatprep.subr.bf16.mxu1 %v323_v1 }
   0x9   :  { %11 = vsyncpa [#allocation3], 0  ;;  %v296_v6 = vld [vmem:[%s400_s3 + $0x20] sm:$0xff]   ;;  %v297_v7 = vld [vmem:[%s400_s3 + $0x18] sm:$0xff]   ;;  %s325_s13 = smov [#allocation2]  }
   0xa   :  { %v298_v8 = vld [vmem:[%s400_s3 + $0x10] sm:$0xff]   ;;  %v299_v9 = vld [vmem:[%s400_s3 + $0x8] sm:$0xff]   ;;  %v300_v10 = vld [vmem:[%s400_s3] sm:$0xff]   ;;  %s213_s14 = sshll.u32 %s325_s13, 4  ;;  %s214_s14 = int_to_ptr.vmem [resolvable:$true] %s213_s14 }
   0xb   :  { %271 = vmatpush3.bf16.msra.mxu1 %v295_v5  ;;  %v228_v11 = vld [vmem:[%s399_s2] ss:$0 sm:$0xff]  ;;  %s301_s3 = scalar_lea.vmem %s214_s14, 256  ;;  %p306_p1 = scmp.lt.s32.totalorder %s214_s14, %s214_s14 }
   0xc   :  { %272 = vmatprep.subr.bf16.mxu1 %v323_v1  ;;  %p302_p0 = scmp.ne.s32.totalorder %s214_s14, %s301_s3  ;;  %p307_p2 = scmp.lt.s32.totalorder %s301_s3, %s301_s3 }
   0xe   :  { %p308_p3 = por %p307_p2, %p306_p1 }
   0xf   :  { %273 = vmatpush3.bf16.msra.mxu1 %v296_v6 }
  0x10   :  { %274 = vmatprep.subr.bf16.mxu1 %v323_v1  ;;  %p309_p4 = pnand %p308_p3, %p302_p0 }
  0x13   :  { %275 = vmatpush3.bf16.msra.mxu1 %v297_v7 }
  0x14   :  { %276 = vmatprep.subr.bf16.mxu1 %v323_v1 }
  0x17   :  { %277 = vmatpush3.bf16.msra.mxu1 %v298_v8 }
  0x18   :  { %278 = vmatprep.subr.bf16.mxu1 %v323_v1 }
  0x1b   :  { %279 = vmatpush3.bf16.msra.mxu1 %v299_v9 }
  0x1c   :  { %280 = vmatprep.subr.bf16.mxu1 %v323_v1 }
  0x1f   :  { %281 = vmatpush3.bf16.msra.mxu1 %v300_v10 }
  0xc5   :  { %v81_v12 = vpop.f32.mrf.mxu0 }
  0xc6   :  { %v82_v13 = vadd.f32 %v228_v11, %v81_v12 }
  0xc7   :  { %v264_v14 = vpop.f32.mrf.mxu0 }
  0xc8   :  { %v88_v15 = vmax.f32 %v82_v13, 0.0 }
  0xc9   :  { %v84_v16 = vpop.f32.mrf.mxu0 }
  0xca   :  { %90 = vst [vmem:[#allocation2] sm:$0xff] %v88_v15  ;;  %v85_v17 = vadd.f32 %v228_v11, %v84_v16 }
  0xcb   :  { %v265_v18 = vpop.f32.mrf.mxu0 }
  0xcc   :  { %v89_v19 = vmax.f32 %v85_v17, 0.0 }
  0xce   :  { %91 = vst [vmem:[#allocation2 + $0x8] sm:$0xff] %v89_v19  ;;  %v92_v20 = vpack.c.bf16 %v89_v19, %v88_v15 }
  0xd0   :  { %283 = vmatmul.mubr.bf16.vlgmr.msra.gmra.mxu1 %v92_v20 }
  0xd1   :  { %312 = shalt.err (!%p309_p4)
}
  0xd2   :  { %s326_s2 = smov 128   ;;  %s327_s15 = smov 8  }
  0xd3   :  { %219 = dma.vmem_to_hbm [thread:$0]  %s214_s14, 256, %s401_s4, [#allocation3], %s326_s2, %s326_s2, %s327_s15  }
 0x190   :  { %v191_v21 = vpop.f32.mrf.mxu1 }
 0x192   :  { %v284_v22 = vpop.f32.mrf.mxu1 }
 0x194   :  { %v194_v23 = vpop.f32.mrf.mxu1 }
 0x195   :  { %v247_v24 = vpack.c.bf16 %v194_v23, %v191_v21 }
 0x196   :  { %v285_v25 = vpop.f32.mrf.mxu1 }
 0x197   :  { %248 = vst [vmem:[%s402_s5] sm:$0xff] %v247_v24  }
 0x198   :  { %321 = dma.done.wait [#allocation3], 256  }
 0x199   :  { %322 = vsyncadd [#allocation3], 4294967040 }
 0x19a   :  { %227 = vsyncpa [#allocation3], 1 }

</bundles_post_ra>
